<compile_context>
chip_gen: v5e
topology: v5e:2x2
jax: 0.10.0
libtpu: 0.0.40
codegen_flags: <defaults>
</compile_context>

<pallas_src>
import jax
import jax.numpy as jnp
from jax.experimental import pallas as pl
from jax.experimental.pallas import tpu as pltpu

_LANE = 128


def modelb2a_kernel(p_ref, x_ref, o_ref):
    # p_ref (SMEM, 4 scalars): [w0, w1 - w0, w_B - (sp1 - sp0), -(sp_B + sp0)]
    # x_ref (VMEM): (2, T) lane-dense tile; row 0 = inputs_A, row 1 = inputs_B
    # o_ref (VMEM): (1, T) joint log-likelihood tile
    x = x_ref[...]                       # (2, T) float32
    a = x[0:1, :]                        # inputs_A  (1, T)
    b = x[1:2, :]                        # inputs_B  (1, T)

    w0 = p_ref[0]
    d_w = p_ref[1]                       # w1 - w0
    coef_b = p_ref[2]                    # w_B - (sp1 - sp0)
    const = p_ref[3]                     # -(sp_B + sp0)

    # logit of A|B for binary b:  (1-b)*w0 + b*w1  ==  w0 + b*(w1 - w0)
    logit_a = w0 + b * d_w
    # joint log-likelihood  = b*w_B - sp_B + a*logit_a - (sp0 + b*(sp1-sp0))
    #                       = a*logit_a + b*coef_b + const
    o_ref[...] = a * logit_a + b * coef_b + const


def model_b2a(inputs, w_b, w_ab, *, max_tile=8192):
    """inputs: (batch, 2) with col 0 = A, col 1 = B (binary). Returns (batch, 1)."""
    batch = inputs.shape[0]

    # Precompute the three softplus values and fold them into 4 scalar params.
    # NOTE: the softplus folding assumes binary inputs_B, which is exactly the
    # Bernoulli setting of this module.
    w_b_s = jnp.asarray(w_b, jnp.float32).reshape(-1)[0]
    w_ab_f = jnp.asarray(w_ab, jnp.float32).reshape(-1)
    w0, w1 = w_ab_f[0], w_ab_f[1]
    sp_b = jax.nn.softplus(w_b_s)
    sp0 = jax.nn.softplus(w0)
    sp1 = jax.nn.softplus(w1)
    params = jnp.stack([w0, w1 - w0, w_b_s - (sp1 - sp0), -(sp_b + sp0)])   # (4,)

    # Lane-dense layout: batch on the lane (last) axis.
    x = inputs.astype(jnp.float32).T                                        # (2, batch)

    tile = min(max_tile, pl.cdiv(batch, _LANE) * _LANE)                     # multiple of 128
    padded = pl.cdiv(batch, tile) * tile
    if padded != batch:
        x = jnp.pad(x, ((0, 0), (0, padded - batch)))

    out = pl.pallas_call(
        modelb2a_kernel,
        out_shape=jax.ShapeDtypeStruct((1, padded), jnp.float32),
        grid=(padded // tile,),
        in_specs=[
            pl.BlockSpec(memory_space=pltpu.MemorySpace.SMEM),              # 4 scalar params
            pl.BlockSpec((2, tile), lambda i: (0, i)),                      # inputs tile
        ],
        out_specs=pl.BlockSpec((1, tile), lambda i: (0, i)),
        compiler_params=pltpu.CompilerParams(
            dimension_semantics=("parallel",)),
        cost_estimate=pl.CostEstimate(
            flops=6 * padded, transcendentals=0,
            bytes_accessed=3 * 4 * padded),
    )(params, x)

    return out[0, :batch].reshape(batch, 1)


def model_b2a_ref(inputs, w_b, w_ab):
    # Pure-JAX reference with the original (un-hoisted) semantics.
    a = inputs[:, 0:1]
    b = inputs[:, 1:2]
    log_p_b = b * w_b[0] - jax.nn.softplus(w_b[0])
    logit_a = (1.0 - b) * w_ab[0] + b * w_ab[1]
    log_p_a_given_b = a * logit_a - jax.nn.softplus(logit_a)
    return log_p_b + log_p_a_given_b


if __name__ == "__main__":
    key = jax.random.PRNGKey(0)

    # deterministic synthetic parameters (logits)
    w_b = jnp.array([0.3], dtype=jnp.float32)            # marginal logit for B
    w_ab = jnp.array([-0.5, 0.8], dtype=jnp.float32)     # conditional logits for A | B in {0,1}

    # primary small case: batch=8, binary inputs (col 0 = A, col 1 = B)
    batch = 8
    inputs = jax.random.bernoulli(key, p=0.5, shape=(batch, 2)).astype(jnp.float32)

    out = model_b2a(inputs, w_b, w_ab)
    out = jax.block_until_ready(out)
    ref = model_b2a_ref(inputs, w_b, w_ab)
    assert out.shape == (batch, 1)
    assert jnp.allclose(out, ref, atol=1e-5, rtol=1e-5), (out, ref)

    # second case exercising lane padding (batch not a multiple of 128)
    batch2 = 300
    inputs2 = jax.random.bernoulli(jax.random.PRNGKey(1), p=0.5,
                                   shape=(batch2, 2)).astype(jnp.float32)
    out2 = jax.block_until_ready(model_b2a(inputs2, w_b, w_ab))
    ref2 = model_b2a_ref(inputs2, w_b, w_ab)
    assert out2.shape == (batch2, 1)
    assert jnp.allclose(out2, ref2, atol=1e-5, rtol=1e-5)

    # third case: multiple grid steps (batch > tile) to exercise the pipeline
    batch3 = 2500
    inputs3 = jax.random.bernoulli(jax.random.PRNGKey(2), p=0.5,
                                   shape=(batch3, 2)).astype(jnp.float32)
    out3 = jax.block_until_ready(model_b2a(inputs3, w_b, w_ab, max_tile=1024))
    ref3 = model_b2a_ref(inputs3, w_b, w_ab)
    assert out3.shape == (batch3, 1)
    assert jnp.allclose(out3, ref3, atol=1e-5, rtol=1e-5)

    print("KERNEL_OK")
</pallas_src>

<mosaic_0001>
module attributes {stable_mosaic.version = 11 : i64} {
  func.func @modelb2a_kernel(%arg0: i32, %arg1: memref<4xf32, #tpu.memory_space<smem>>, %arg2: memref<2x128xf32, #tpu.memory_space<vmem>>, %arg3: memref<1x128xf32, #tpu.memory_space<vmem>>) attributes {dimension_semantics = [#tpu.dimension_semantics<parallel>], iteration_bounds = array<i64: 1>, scalar_prefetch = 0 : i64, scratch_operands = 0 : i64, tpu.core_type = #tpu.core_type<tc>, window_params = [{transform_indices = @transform_0, window_bounds = array<i64: 4>}, {transform_indices = @transform_1, window_bounds = array<i64: 2, 128>}, {transform_indices = @transform_2, window_bounds = array<i64: 1, 128>}]} {
    %c0 = arith.constant 0 : index
    %c0_0 = arith.constant 0 : index
    %0 = vector.load %arg2[%c0, %c0_0] : memref<2x128xf32, #tpu.memory_space<vmem>>, vector<2x128xf32>
    %1 = vector.extract_strided_slice %0 {offsets = [0, 0], sizes = [1, 128], strides = [1, 1]} : vector<2x128xf32> to vector<1x128xf32>
    %2 = vector.extract_strided_slice %0 {offsets = [1, 0], sizes = [1, 128], strides = [1, 1]} : vector<2x128xf32> to vector<1x128xf32>
    %c0_1 = arith.constant 0 : index
    %3 = memref.load %arg1[%c0_1] : memref<4xf32, #tpu.memory_space<smem>>
    %c1 = arith.constant 1 : index
    %4 = memref.load %arg1[%c1] : memref<4xf32, #tpu.memory_space<smem>>
    %c2 = arith.constant 2 : index
    %5 = memref.load %arg1[%c2] : memref<4xf32, #tpu.memory_space<smem>>
    %c3 = arith.constant 3 : index
    %6 = memref.load %arg1[%c3] : memref<4xf32, #tpu.memory_space<smem>>
    %7 = vector.broadcast %4 : f32 to vector<1x128xf32>
    %8 = arith.mulf %2, %7 : vector<1x128xf32>
    %9 = vector.broadcast %3 : f32 to vector<1x128xf32>
    %10 = arith.addf %9, %8 : vector<1x128xf32>
    %11 = arith.mulf %1, %10 : vector<1x128xf32>
    %12 = vector.broadcast %5 : f32 to vector<1x128xf32>
    %13 = arith.mulf %2, %12 : vector<1x128xf32>
    %14 = arith.addf %11, %13 : vector<1x128xf32>
    %15 = vector.broadcast %6 : f32 to vector<1x128xf32>
    %16 = arith.addf %14, %15 : vector<1x128xf32>
    %c0_2 = arith.constant 0 : index
    %c0_3 = arith.constant 0 : index
    %17 = vector.load %arg3[%c0_2, %c0_3] : memref<1x128xf32, #tpu.memory_space<vmem>>, vector<1x128xf32>
    tpu.vector_store %arg3[%c0_2, %c0_3], %16 {strides = array<i32>} : memref<1x128xf32, #tpu.memory_space<vmem>>, vector<1x128xf32>,
    return
  }
  func.func @transform_0(%arg0: i32) -> i32 {
    %c0_i32 = arith.constant 0 : i32
    %c0_i32_0 = arith.constant 0 : i32
    return %c0_i32 : i32
  }
  func.func @transform_1(%arg0: i32) -> (i32, i32) {
    %c0_i32 = arith.constant 0 : i32
    %c0_i32_0 = arith.constant 0 : i32
    return %c0_i32, %arg0 : i32, i32
  }
  func.func @transform_2(%arg0: i32) -> (i32, i32) {
    %c0_i32 = arith.constant 0 : i32
    %c0_i32_0 = arith.constant 0 : i32
    return %c0_i32, %arg0 : i32, i32
  }
}

</mosaic_0001>

<bundles_post_ra>
// kernel: tpu_custom_call.1
= control target key start
LH: loop header
LB: loop body
LE: loop exit
PB: predicated region body
PF: predicated region fallthrough
CT: control target
= control target key end

     0   :  { %7 = vsyncpa [#allocation5], 0  ;;  %s178_s0 = inlined_call_operand.hbm [shape: f32[4], index: 0, kind: input, shape index: {}]   ;;  %s179_s1 = inlined_call_operand.hbm [shape: f32[2,128], index: 1, kind: input, shape index: {}]   ;;  %s180_s2 = inlined_call_operand.hbm [shape: f32[1,128], index: 2, kind: output, shape index: {}]  }
   0x1   :  { %8 = vsyncpa [#allocation3], 0 }
   0x2   :  { %9 = vsyncpa [#allocation4], 0  ;;  %s15_s11 = sshll.u32 %s178_s0, 4  ;;  %s24_s14 = sshll.u32 %s179_s1, 4  ;;  %s16_s11 = int_to_ptr.hbm [resolvable:$true] %s15_s11  ;;  %s25_s14 = int_to_ptr.hbm [resolvable:$true] %s24_s14 }
   0x3   :  { %s151_s15 = smov [#allocation2]   ;;  %s152_s16 = smov [#allocation6]  }
   0x4   :  { %18 = dma.hbm_to_smem %s16_s11, 16, %s151_s15, [#allocation5]  }
   0x5   :  { %s26_s17 = sshll.u32 %s152_s16, 4  ;;  %s27_s17 = int_to_ptr.vmem [resolvable:$true] %s26_s17 }
   0x6   :  { %29 = dma.hbm_to_vmem [thread:$0]  %s25_s14, 32, %s27_s17, [#allocation3]  }
   0x7   :  { %145 = dma.done.wait [#allocation5], 16  }
   0x8   :  { %146 = vsyncadd [#allocation5], 4294967280 }
   0x9   :  { %147 = dma.done.wait [#allocation3], 32  }
   0xa   :  { %148 = vsyncadd [#allocation3], 4294967264 }
   0xb   :  { %38 = sfence }
   0xc   :  { %s40_s18 = sld [smem:[#allocation2]]  ;;  %v39_v0 = vld [vmem:[#allocation6] sm:$0x3]  ;;  %s153_s1 = smov [#allocation7]  }
   0xd   :  { %s79_s19 = sld [smem:[#allocation2 + $0x1]]  ;;  %s66_s21 = sshll.u32 %s153_s1, 4  ;;  %s67_s21 = int_to_ptr.vmem [resolvable:$true] %s66_s21 }
   0xe   :  { %s80_s0 = sld [smem:[#allocation2 + $0x2]]  ;;  %s68_s24 = sshll.u32 %s180_s2, 4  ;;  %s69_s24 = int_to_ptr.hbm [resolvable:$true] %s68_s24 }
   0xf   :  { %s81_s20 = sld [smem:[#allocation2 + $0x3]] }
  0x12   :  { %v46_v2 = vstv %s40_s18 }
  0x13   :  { %v44_v1 = vstv %s79_s19 }
  0x14   :  { %v45_v3 = vmul.f32 %v44_v1, %v39_v0  ;;  %v52_v4 = vstv %s80_s0 }
  0x15   :  { %v53_v5 = vmul.f32 %v52_v4, %v39_v0  ;;  %v58_v10 = vstv %s81_s20 }
  0x16   :  { %v47_v6 = vadd.f32 %v46_v2, %v45_v3 }
  0x17   :  { %v55_v8 = vrot.slane %v53_v5, 1 }
  0x18   :  { %v49_v7 = vrot.slane %v47_v6, 1 }
  0x1a   :  { %v51_v9 = vmul.f32 %v49_v7, %v39_v0 }
  0x1c   :  { %v57_v11 = vadd.f32 %v55_v8, %v51_v9 }
  0x1e   :  { %v59_v12 = vadd.f32 %v58_v10, %v57_v11 }
  0x20   :  { %60 = vst [vmem:[#allocation7] sm:$0x1] %v59_v12 }
  0x21   :  { %71 = dma.vmem_to_hbm [thread:$0]  %s67_s21, 16, %s69_s24, [#allocation4]  }
  0x22   :  { %149 = dma.done.wait [#allocation4], 16  }
  0x23   :  { %150 = vsyncadd [#allocation4], 4294967280 }
  0x24   :  { %76 = vsyncpa [#allocation3], 1 }
  0x25   :  { %77 = vsyncpa [#allocation4], 1 }
  0x26   :  { %78 = vsyncpa [#allocation5], 1 }

</bundles_post_ra>
